<compile_context>
chip_gen: v7x
topology: tpu7x:2x2x1
jax: 0.10.0
libtpu: 0.0.40
codegen_flags: <defaults>
</compile_context>

<pallas_src>
import functools

import jax
import jax.numpy as jnp
from jax.experimental import pallas as pl
from jax.experimental.pallas import tpu as pltpu


_MAX_N_BLK = 8  # max batch elements per grid step (keeps the unrolled loop short)


def _outconv_kernel(x_ref, w_ref, b_ref, o_ref, *, n_blk, precision):
    # x_ref: (n_blk, C_in, T)   w_ref: (C_out, C_in)   b_ref: (C_out, 1)
    # o_ref: (n_blk, C_out, T)
    w = w_ref[...]
    b = b_ref[...].astype(jnp.float32)
    for i in range(n_blk):
        y = jnp.dot(w, x_ref[i], preferred_element_type=jnp.float32,
                    precision=precision)
        o_ref[i] = (y + b).astype(o_ref.dtype)


def _physical_vmem_bytes():
    try:
        info = pltpu.get_tpu_info()
        v = getattr(info, "vmem_capacity_bytes", None)
        if v:
            return int(v)
    except Exception:
        pass
    return 64 * 1024 * 1024  # conservative fallback (v7x per-TC size)


def _pick_tiles(n, hw, c_in, c_out, dsize, budget, max_tile):
    """Pick (n_blk, tile_hw).  The VMEM budget is the only cap on the tile."""
    weight_bytes = 2 * c_in * c_out * dsize + 2 * c_out * dsize  # w + bias (2x buffered)

    def fits(nb, t):
        blocks = 2 * nb * (c_in + c_out) * t * dsize  # double-buffered x + out blocks
        return weight_bytes + blocks <= budget

    cap = hw if max_tile is None else min(hw, max_tile)

    # Case A: whole H*W as one lane-dense block (allowed even when it is not a
    # multiple of 128 because it equals the full array dim).  Amortize the
    # per-step overhead further by blocking batch elements per step.
    if cap >= hw and fits(1, hw):
        nb = 1
        while nb < min(n, _MAX_N_BLK) and fits(nb * 2, hw):
            nb *= 2
        nb = min(nb, n)
        return nb, hw

    # Case B: 128-aligned spatial tile; ragged last block is clipped by Pallas
    # (no jnp.pad, no output slice -> no extra HBM traffic).
    t = max((cap // 128) * 128, 128)
    while t > 128 and not fits(1, t):
        t -= 128
    assert fits(1, t), (
        "OutConv: C_in*C_out too large for a VMEM-resident weight block.")
    # TODO(synk): add C_out / C_in grid tiling with a VMEM f32 accumulator for
    # very large channel counts (C_in*C_out >= 512*512), esp. on v7x.
    return 1, t


def out_conv(x_nchw, weight, bias, *, max_tile_hw=None):
    """1x1 Conv2d forward, PyTorch Conv2d semantics (NCHW in / NCHW out).

    x_nchw: (N, C_in, H, W)
    weight: (C_out, C_in, 1, 1)
    bias:   (C_out,)
    """
    N, C_in, H, W = x_nchw.shape
    C_out = weight.shape[0]
    HW = H * W
    dsize = jnp.dtype(x_nchw.dtype).itemsize

    # Free reshapes (contiguous trailing-dim collapse); no transposes, no pads.
    x3 = x_nchw.reshape(N, C_in, HW)
    w2d = weight.reshape(C_out, C_in)
    b2d = bias.reshape(C_out, 1)

    # Generation-aware VMEM budget: ~50% of physical per-TC VMEM, capped at
    # 48 MiB (leaves compiler-scratch headroom, esp. on v7x's 64 MiB/TC).
    phys = _physical_vmem_bytes()
    budget = min(phys // 2, 48 * 1024 * 1024)
    vmem_limit = int(min(budget + 8 * 1024 * 1024, (phys * 3) // 4))

    n_blk, tile_hw = _pick_tiles(N, HW, C_in, C_out, dsize, budget, max_tile_hw)
    grid = (pl.cdiv(N, n_blk), pl.cdiv(HW, tile_hw))

    # f32 inputs: HIGHEST precision matches PyTorch f32 conv numerics; the MXU
    # is otherwise idle in this memory-bound kernel, so the extra passes are free.
    precision = (jax.lax.Precision.HIGHEST
                 if jnp.dtype(x_nchw.dtype) == jnp.float32 else None)
    kernel = functools.partial(_outconv_kernel, n_blk=n_blk, precision=precision)

    flops = 2 * N * HW * C_in * C_out
    bytes_accessed = (N * HW * (C_in + C_out) * dsize
                      + C_in * C_out * dsize + C_out * dsize)

    y3 = pl.pallas_call(
        kernel,
        out_shape=jax.ShapeDtypeStruct((N, C_out, HW), x_nchw.dtype),
        grid_spec=pltpu.PrefetchScalarGridSpec(
            num_scalar_prefetch=0,
            grid=grid,
            in_specs=[
                pl.BlockSpec((n_blk, C_in, tile_hw), lambda n, j: (n, 0, j)),
                pl.BlockSpec((C_out, C_in), lambda n, j: (0, 0)),
                pl.BlockSpec((C_out, 1), lambda n, j: (0, 0)),
            ],
            out_specs=pl.BlockSpec((n_blk, C_out, tile_hw),
                                   lambda n, j: (n, 0, j)),
        ),
        compiler_params=pltpu.CompilerParams(
            dimension_semantics=("parallel", "parallel"),
            vmem_limit_bytes=vmem_limit,
        ),
        cost_estimate=pl.CostEstimate(
            flops=flops, transcendentals=0, bytes_accessed=bytes_accessed),
    )(x3, w2d, b2d)

    return y3.reshape(N, C_out, H, W)


if __name__ == "__main__":
    def ref_conv1x1(x, w, b):
        co, ci = w.shape[0], w.shape[1]
        return (jnp.einsum("nchw,oc->nohw", x, w.reshape(co, ci),
                           precision=jax.lax.Precision.HIGHEST)
                + b[None, :, None, None])

    # --- Test 1: small image -> whole H*W in one block, batch-blocked (nb=2).
    k1, k2, k3 = jax.random.split(jax.random.PRNGKey(0), 3)
    N, C_in, C_out, H, W = 2, 4, 3, 16, 16
    x = jax.random.normal(k1, (N, C_in, H, W), dtype=jnp.float32)
    weight = jax.random.normal(k2, (C_out, C_in, 1, 1), dtype=jnp.float32) * 0.1
    bias = jax.random.normal(k3, (C_out,), dtype=jnp.float32) * 0.1

    y = jax.block_until_ready(out_conv(x, weight, bias))
    assert y.shape == (N, C_out, H, W)
    assert jnp.allclose(y, ref_conv1x1(x, weight, bias), atol=1e-5, rtol=1e-5)

    # --- Test 2: 128-lane spatial tiles with a ragged last block (H*W = 400),
    # exercising the no-pad cdiv path.
    k4, k5, k6 = jax.random.split(jax.random.PRNGKey(1), 3)
    N2, C_in2, C_out2, H2, W2 = 3, 8, 5, 20, 20
    x2 = jax.random.normal(k4, (N2, C_in2, H2, W2), dtype=jnp.float32)
    w2 = jax.random.normal(k5, (C_out2, C_in2, 1, 1), dtype=jnp.float32) * 0.1
    b2 = jax.random.normal(k6, (C_out2,), dtype=jnp.float32) * 0.1

    y2 = jax.block_until_ready(out_conv(x2, w2, b2, max_tile_hw=128))
    assert y2.shape == (N2, C_out2, H2, W2)
    assert jnp.allclose(y2, ref_conv1x1(x2, w2, b2), atol=1e-5, rtol=1e-5)

    print("KERNEL_OK")
</pallas_src>

<mosaic_0001>
module attributes {stable_mosaic.version = 11 : i64} {
  func.func @_outconv_kernel(%arg0: i32, %arg1: i32, %arg2: memref<2x4x256xf32, #tpu.memory_space<vmem>>, %arg3: memref<3x4xf32, #tpu.memory_space<vmem>>, %arg4: memref<3x1xf32, #tpu.memory_space<vmem>>, %arg5: memref<2x3x256xf32, #tpu.memory_space<vmem>>) attributes {dimension_semantics = [#tpu.dimension_semantics<parallel>, #tpu.dimension_semantics<parallel>], iteration_bounds = array<i64: 1, 1>, scalar_prefetch = 0 : i64, scratch_operands = 0 : i64, tpu.core_type = #tpu.core_type<tc>, window_params = [{transform_indices = @transform_0, window_bounds = array<i64: 2, 4, 256>}, {pipeline_mode = #tpu.pipeline_mode<synchronous>, transform_indices = @transform_1, window_bounds = array<i64: 3, 4>}, {pipeline_mode = #tpu.pipeline_mode<synchronous>, transform_indices = @transform_2, window_bounds = array<i64: 3, 1>}, {transform_indices = @transform_3, window_bounds = array<i64: 2, 3, 256>}]} {
    %c0 = arith.constant 0 : index
    %c0_0 = arith.constant 0 : index
    %0 = vector.load %arg3[%c0, %c0_0] : memref<3x4xf32, #tpu.memory_space<vmem>>, vector<3x4xf32>
    %c0_1 = arith.constant 0 : index
    %c0_2 = arith.constant 0 : index
    %1 = vector.load %arg4[%c0_1, %c0_2] : memref<3x1xf32, #tpu.memory_space<vmem>>, vector<3x1xf32>
    %c0_3 = arith.constant 0 : index
    %c0_4 = arith.constant 0 : index
    %c0_5 = arith.constant 0 : index
    %2 = vector.load %arg2[%c0_3, %c0_4, %c0_5] : memref<2x4x256xf32, #tpu.memory_space<vmem>>, vector<1x4x256xf32>
    %3 = vector.shape_cast %2 : vector<1x4x256xf32> to vector<4x256xf32>
    %cst = arith.constant dense<0.000000e+00> : vector<3x256xf32>
    %4 = tpu.matmul %0, %3, %cst {dimension_numbers = #tpu.dot_dimension_numbers<[1], [0], [0], [1], [0, 0, 1, 1], [], []>, precision = #tpu.contract_precision<fp32>} : vector<3x4xf32>, vector<4x256xf32>, vector<3x256xf32> -> vector<3x256xf32>
    %5 = vector.broadcast %1 : vector<3x1xf32> to vector<3x256xf32>
    %6 = arith.addf %4, %5 : vector<3x256xf32>
    %c0_6 = arith.constant 0 : index
    %c0_7 = arith.constant 0 : index
    %c0_8 = arith.constant 0 : index
    %7 = vector.load %arg5[%c0_6, %c0_7, %c0_8] : memref<2x3x256xf32, #tpu.memory_space<vmem>>, vector<1x3x256xf32>
    %8 = vector.shape_cast %7 : vector<1x3x256xf32> to vector<3x256xf32>
    %9 = vector.shape_cast %6 : vector<3x256xf32> to vector<1x3x256xf32>
    tpu.vector_store %arg5[%c0_6, %c0_7, %c0_8], %9 {strides = array<i32>} : memref<2x3x256xf32, #tpu.memory_space<vmem>>, vector<1x3x256xf32>,
    %c1 = arith.constant 1 : index
    %c0_9 = arith.constant 0 : index
    %c0_10 = arith.constant 0 : index
    %10 = vector.load %arg2[%c1, %c0_9, %c0_10] : memref<2x4x256xf32, #tpu.memory_space<vmem>>, vector<1x4x256xf32>
    %11 = vector.shape_cast %10 : vector<1x4x256xf32> to vector<4x256xf32>
    %cst_11 = arith.constant dense<0.000000e+00> : vector<3x256xf32>
    %12 = tpu.matmul %0, %11, %cst_11 {dimension_numbers = #tpu.dot_dimension_numbers<[1], [0], [0], [1], [0, 0, 1, 1], [], []>, precision = #tpu.contract_precision<fp32>} : vector<3x4xf32>, vector<4x256xf32>, vector<3x256xf32> -> vector<3x256xf32>
    %13 = vector.broadcast %1 : vector<3x1xf32> to vector<3x256xf32>
    %14 = arith.addf %12, %13 : vector<3x256xf32>
    %c1_12 = arith.constant 1 : index
    %c0_13 = arith.constant 0 : index
    %c0_14 = arith.constant 0 : index
    %15 = vector.load %arg5[%c1_12, %c0_13, %c0_14] : memref<2x3x256xf32, #tpu.memory_space<vmem>>, vector<1x3x256xf32>
    %16 = vector.shape_cast %15 : vector<1x3x256xf32> to vector<3x256xf32>
    %17 = vector.shape_cast %14 : vector<3x256xf32> to vector<1x3x256xf32>
    tpu.vector_store %arg5[%c1_12, %c0_13, %c0_14], %17 {strides = array<i32>} : memref<2x3x256xf32, #tpu.memory_space<vmem>>, vector<1x3x256xf32>,
    return
  }
  func.func @transform_0(%arg0: i32, %arg1: i32) -> (i32, i32, i32) {
    %c0_i32 = arith.constant 0 : i32
    %c0_i32_0 = arith.constant 0 : i32
    return %arg0, %c0_i32, %arg1 : i32, i32, i32
  }
  func.func @transform_1(%arg0: i32, %arg1: i32) -> (i32, i32) {
    %c0_i32 = arith.constant 0 : i32
    %c0_i32_0 = arith.constant 0 : i32
    %c0_i32_1 = arith.constant 0 : i32
    return %c0_i32, %c0_i32_0 : i32, i32
  }
  func.func @transform_2(%arg0: i32, %arg1: i32) -> (i32, i32) {
    %c0_i32 = arith.constant 0 : i32
    %c0_i32_0 = arith.constant 0 : i32
    %c0_i32_1 = arith.constant 0 : i32
    return %c0_i32, %c0_i32_0 : i32, i32
  }
  func.func @transform_3(%arg0: i32, %arg1: i32) -> (i32, i32, i32) {
    %c0_i32 = arith.constant 0 : i32
    %c0_i32_0 = arith.constant 0 : i32
    return %arg0, %c0_i32, %arg1 : i32, i32, i32
  }
}

</mosaic_0001>

<bundles_post_ra>
// kernel: tpu_custom_call.1
= control target key start
LH: loop header
LB: loop body
LE: loop exit
PB: predicated region body
PF: predicated region fallthrough
CT: control target
= control target key end

     0   :  { %8 = vsyncpa [#allocation3], 0  ;;  %s1058_s12 = smov [#allocation2]   ;;  %s1140_s0 = inlined_call_operand.hbm [shape: f32[2,4,256], index: 0, kind: input, shape index: {}]   ;;  %s1141_s1 = inlined_call_operand.vmem [shape: f32[3,4], index: 1, kind: input, shape index: {}]   ;;  %s1142_s2 = inlined_call_operand.vmem [shape: f32[3,1], index: 2, kind: input, shape index: {}]   ;;  %s1143_s3 = inlined_call_operand.vmem [shape: f32[2,3,256], index: 3, kind: output, shape index: {}]  }
   0x1   :  { %s14_s13 = sshll.u32 %s1058_s12, 4  ;;  %s1034_s16 = scalar_lea.hbm %s1140_s0, 256  ;;  %s15_s13 = int_to_ptr.vmem [resolvable:$true] %s14_s13 }
   0x2   :  { %p1035_p0 = scmp.ne.s32.totalorder %s1140_s0, %s1034_s16  ;;  %p1038_p1 = scmp.lt.u32.totalorder %s1034_s16, %s1140_s0 }
   0x4   :  { %p1040_p2 = pnand %p1038_p1, %p1035_p0 }
   0x6   :  { %1043 = shalt.err (!%p1040_p2)
}
   0x7   :  { %s1044_s21 = scalar_lea.vmem %s15_s13, 256  ;;  %p1049_p4 = scmp.lt.s32.totalorder %s15_s13, %s15_s13 }
   0x8   :  { %p1045_p3 = scmp.ne.s32.totalorder %s15_s13, %s1044_s21  ;;  %p1050_p5 = scmp.lt.s32.totalorder %s1044_s21, %s1044_s21 }
   0xa   :  { %p1051_p6 = por %p1050_p5, %p1049_p4 }
   0xc   :  { %p1052_p7 = pnand %p1051_p6, %p1045_p3 }
   0xe   :  { %1055 = shalt.err (!%p1052_p7)
}
   0xf   :  { %s1059_s22 = smov 128   ;;  %s1060_s23 = smov 8  }
  0x10   :  { %20 = dma.hbm_to_vmem [thread:$0]  %s1140_s0, 256, %s15_s13, [#allocation3], %s1059_s22, %s1059_s22, %s1060_s23  }
  0x11   :  { %1056 = dma.done.wait [#allocation3], 256  }
  0x12   :  { %1057 = vsyncadd [#allocation3], 4294967040  ;;  %v1061_v0 = vmov 0.0   ;;  %v1062_v1 = vmov 0   ;;  %vm42_vm0 = vcmask 1043456   ;;  %vm38_vm1 = vcmask 31744  }
  0x13   :  { %113 = vmatprep.mubr.f32.mxu0 %v1061_v0  ;;  %591 = vmatprep.mubr.f32.mxu1 %v1061_v0  ;;  %v30_v2 = vld [vmem:[#allocation2] sm:$0xff]  ;;  %v518_v3 = vld [vmem:[#allocation2 + $0x8] sm:$0xff] }
  0x14   :  { %1031 = vset.pattern.permute.xlu0 %v1062_v1  ;;  %v28_v4 = vld [vmem:[%s1141_s1] sm:$0x7]  ;;  %v37_v5 = vcombine.high %v30_v2, %v30_v2  ;;  %v520_v6 = vcombine.high %v518_v3, %v518_v3  ;;  %v43_v7 = vsel %vm42_vm0, %v30_v2, 0  ;;  %v521_v8 = vsel %vm42_vm0, %v518_v3, 0 }
  0x15   :  { %v29_v9 = vld [vmem:[%s1142_s2] sm:$0x7]  ;;  %v1103_v10 = vand.u32 4294901760, %v43_v7  ;;  %v1105_v11 = vand.u32 4294901760, %v521_v8  ;;  %v40_v12 = vsel %vm38_vm1, %v28_v4, 0 }
  0x16   :  { %33 = vperm.xlu0 %1031, %v29_v9   ;;  %v45_v13 = vsel %vm42_vm0, %v37_v5, 0  ;;  %v523_v14 = vsel %vm42_vm0, %v520_v6, 0  ;;  %v1107_v15 = vand.u32 4294901760, %v40_v12 }
  0x17   :  { %v47_v16 = vand.u32 4294901760, %v45_v13  ;;  %v525_v17 = vand.u32 4294901760, %v523_v14  ;;  %v132_v18 = vsub.f32 %v43_v7, %v1103_v10  ;;  %v610_v19 = vsub.f32 %v521_v8, %v1105_v11 }
  0x18   :  { %v115_v20 = vsub.f32 %v40_v12, %v1107_v15 }
  0x19   :  { %48 = vmatprep.subr.mxu0 %v47_v16  ;;  %526 = vmatprep.subr.mxu1 %v525_v17  ;;  %v126_v21 = vsub.f32 %v45_v13, %v47_v16  ;;  %v604_v22 = vsub.f32 %v523_v14, %v525_v17  ;;  %v133_v23 = vand.u32 4294901760, %v132_v18  ;;  %v611_v24 = vand.u32 4294901760, %v610_v19 }
  0x1a   :  { %50 = vmatpush1.msra.mxu0 %v1103_v10  ;;  %528 = vmatpush1.msra.mxu1 %v1105_v11  ;;  %v116_v25 = vand.u32 4294901760, %v115_v20 }
  0x1b   :  { %v127_v26 = vand.u32 4294901760, %v126_v21  ;;  %v605_v27 = vand.u32 4294901760, %v604_v22  ;;  %v134_v28 = vsub.f32 %v132_v18, %v133_v23  ;;  %v612_v29 = vsub.f32 %v610_v19, %v611_v24 }
  0x1c   :  { %v117_v30 = vsub.f32 %v115_v20, %v116_v25 }
  0x1d   :  { %v128_v31 = vsub.f32 %v126_v21, %v127_v26  ;;  %v606_v32 = vsub.f32 %v604_v22, %v605_v27  ;;  %v135_v34 = vand.u32 4294901760, %v134_v28  ;;  %v613_v35 = vand.u32 4294901760, %v612_v29 }
  0x1e   :  { %v118_v33 = vand.u32 4294901760, %v117_v30 }
  0x1f   :  { %v129_v36 = vand.u32 4294901760, %v128_v31  ;;  %v607_v37 = vand.u32 4294901760, %v606_v32 }
  0x20   :  { %119 = vmatmul.mubr.f32.vlgmr.msra.gmra.mrb[0].mxu0 %v118_v33  ;;  %597 = vmatmul.mubr.f32.vlgmr.msra.gmra.mrb[0].mxu1 %v118_v33 }
  0x21   :  { %130 = vmatprep.subr.mxu0 %v129_v36  ;;  %608 = vmatprep.subr.mxu1 %v607_v37 }
  0x22   :  { %136 = vmatpush1.msra.mxu0 %v135_v34  ;;  %614 = vmatpush1.msra.mxu1 %v613_v35 }
  0x23   :  { %199 = vmatprep.mubr.f32.mxu0 %v1061_v0  ;;  %677 = vmatprep.mubr.f32.mxu1 %v1061_v0 }
  0x24   :  { %209 = vmatprep.subr.mxu0 %v126_v21  ;;  %687 = vmatprep.subr.mxu1 %v604_v22 }
  0x28   :  { %201 = vmatmul.mubr.f32.vlgmr.msra.gmra.mrb[0].mxu0 %v1107_v15  ;;  %679 = vmatmul.mubr.f32.vlgmr.msra.gmra.mrb[0].mxu1 %v1107_v15 }
  0x29   :  { %212 = vmatpush1.msra.mxu0 %v132_v18  ;;  %690 = vmatpush1.msra.mxu1 %v610_v19 }
  0x2a   :  { %275 = vmatprep.mubr.f32.mxu0 %v1061_v0  ;;  %753 = vmatprep.mubr.f32.mxu1 %v1061_v0 }
  0x2b   :  { %285 = vmatprep.subr.mxu0 %v47_v16  ;;  %763 = vmatprep.subr.mxu1 %v525_v17 }
  0x30   :  { %278 = vmatmul.mubr.f32.vlgmr.msra.gmra.mrb[0].mxu0 %v115_v20  ;;  %756 = vmatmul.mubr.f32.vlgmr.msra.gmra.mrb[0].mxu1 %v115_v20 }
  0x31   :  { %287 = vmatpush1.msra.mxu0 %v1103_v10  ;;  %765 = vmatpush1.msra.mxu1 %v1105_v11 }
  0x32   :  { %350 = vmatprep.mubr.f32.mxu0 %v1061_v0  ;;  %828 = vmatprep.mubr.f32.mxu1 %v1061_v0 }
  0x33   :  { %363 = vmatprep.subr.mxu0 %v127_v26  ;;  %841 = vmatprep.subr.mxu1 %v605_v27 }
  0x38   :  { %354 = vmatmul.mubr.f32.vlgmr.msra.gmra.mrb[0].mxu0 %v116_v25  ;;  %832 = vmatmul.mubr.f32.vlgmr.msra.gmra.mrb[0].mxu1 %v116_v25 }
  0x39   :  { %367 = vmatpush1.msra.mxu0 %v133_v23  ;;  %845 = vmatpush1.msra.mxu1 %v611_v24 }
  0x3a   :  { %430 = vmatprep.mubr.f32.mxu0 %v1061_v0  ;;  %908 = vmatprep.mubr.f32.mxu1 %v1061_v0 }
  0x3b   :  { %439 = vmatprep.subr.mxu0 %v47_v16  ;;  %917 = vmatprep.subr.mxu1 %v525_v17 }
  0x40   :  { %432 = vmatmul.mubr.f32.vlgmr.msra.gmra.mrb[0].mxu0 %v1107_v15  ;;  %910 = vmatmul.mubr.f32.vlgmr.msra.gmra.mrb[0].mxu1 %v1107_v15 }
  0x41   :  { %441 = vmatpush1.msra.mxu0 %v1103_v10  ;;  %919 = vmatpush1.msra.mxu1 %v1105_v11 }
  0x42   :  { %504 = vmatprep.mubr.f32.mxu0 %v1061_v0  ;;  %982 = vmatprep.mubr.f32.mxu1 %v1061_v0 }
  0x48   :  { %506 = vmatmul.mubr.f32.vlgmr.msra.gmra.mrb[0].mxu0 %v1107_v15  ;;  %984 = vmatmul.mubr.f32.vlgmr.msra.gmra.mrb[0].mxu1 %v1107_v15 }
  0x95   :  { %v34_v38 = vpop.permute.xlu0 %33 }
 0x11b   :  { %v507_v39 = vpop.f32.mrb[0].mxu0  ;;  %v985_v40 = vpop.f32.mrb[0].mxu1 }
 0x11c   :  { %v1002_v41 = vadd.f32 %v507_v39, %v34_v38  ;;  %v1004_v42 = vadd.f32 %v985_v40, %v34_v38  ;;  %v509_v43 = vpop.f32.mrb[1].mxu0  ;;  %v987_v44 = vpop.f32.mrb[1].mxu1 }
 0x11d   :  { %v1003_v45 = vadd.f32 %v509_v43, %v34_v38  ;;  %v1005_v46 = vadd.f32 %v987_v44, %v34_v38 }
 0x11f   :  { %v514_v47 = vcombine.low %v1002_v41, %v1003_v45  ;;  %v992_v48 = vcombine.low %v1004_v42, %v1005_v46 }
 0x121   :  { %516 = vst [vmem:[%s1143_s3] sm:$0x77] %v514_v47  ;;  %1001 = vst [vmem:[%s1143_s3 + $0x8] sm:$0x77] %v992_v48 }
 0x122   :  { %1000 = vsyncpa [#allocation3], 1 }

</bundles_post_ra>
